<compile_context>
chip_gen: v6e
topology: v6e:2x2x1
jax: 0.10.0
libtpu: 0.0.40
codegen_flags: <defaults>
</compile_context>

<pallas_src>
import jax
import jax.numpy as jnp
import numpy as np
from jax.experimental import pallas as pl
from jax.experimental.pallas import tpu as pltpu


def _round_up(x, m):
    return -(-x // m) * m


def _attn_energies_kernel(w2_ref, enc_ref, out_ref):
    """One (batch-tile, L-tile) step: energies = W2 @ enc_block^T on the MXU.

    w2_ref : (n_passes, M_pad, TB*H)  block-diagonal projected hidden state
    enc_ref: (tile_l, TB*H)           encoder block, native flattened layout
    out_ref: (M_pad, tile_l)          lane-dense energy tile
    """
    dn = (((1,), (1,)), ((), ()))                 # contract last dims: A @ B^T
    enc = enc_ref[...]                            # bf16 stays bf16 (MXU-native)
    acc = jax.lax.dot_general(w2_ref[0], enc, dn,
                              preferred_element_type=jnp.float32)
    for p in range(1, w2_ref.shape[0]):           # bf16 hi/lo split (static)
        acc = acc + jax.lax.dot_general(w2_ref[p], enc, dn,
                                        preferred_element_type=jnp.float32)
    out_ref[...] = acc


def _pick_tb(B, H, itemsize):
    """Batch-tile size.  TB == B (single tile) for the typical B <= 8 decode
    case; otherwise prefer a divisor of B whose flattened width is 128-aligned
    (TB = 16 for bf16 widens MXU N and matches the bf16 sublane tiling)."""
    if B <= 8:
        return B
    for tb in ([16, 8] if itemsize == 2 else [8]):
        if B % tb == 0 and (tb * H) % 128 == 0:
            return tb
    return B   # fallback: one flattened batch tile (correct, just less tight)


def _pick_tile_l(tb, H, itemsize, budget_bytes=8 * 1024 * 1024):
    """Largest multiple-of-128 L tile whose double-buffered enc block fits a
    v7x-safe budget (v5e/v6e have more VMEM headroom but gains are <5%)."""
    tl = budget_bytes // (2 * tb * H * itemsize)
    tl = max(128, (tl // 128) * 128)
    return min(tl, 2048)


def attn_general(hidden, encoder_outputs, w_attn, b_attn, *, tile_l=None):
    """hidden (1,B,H), encoder_outputs (L,B,H) -> (B,1,L) attention weights."""
    L, B, H = encoder_outputs.shape
    enc_dtype = encoder_outputs.dtype
    itemsize = jnp.dtype(enc_dtype).itemsize
    hp = jax.lax.Precision.HIGHEST

    # ---- tiny O(B*H^2) precompute in XLA (keeps W out of the kernel) --------
    hid = hidden[0].astype(jnp.float32)                              # (B, H)
    hw = jnp.dot(hid, w_attn.astype(jnp.float32), precision=hp)      # (B, H)
    const = jnp.dot(hid, b_attn.astype(jnp.float32), precision=hp)   # (B,)

    # ---- tiling --------------------------------------------------------------
    TB = _pick_tb(B, H, itemsize)
    num_b = B // TB
    K = TB * H
    M_pad = _round_up(TB, 8)                     # sublane-aligned MXU M dim
    sub = 8 if itemsize == 4 else 16
    if tile_l is None:
        tile_l = _pick_tile_l(TB, H, itemsize)
    else:
        tile_l = max(sub, (tile_l // sub) * sub)
    if tile_l >= L:
        tile_l = L                               # single full block, no OOB
    num_l = -(-L // tile_l)
    l_pad = num_l * tile_l                       # tail columns sliced off below

    # ---- block-diagonal W2: W2[g, i, i*H + h] = hw[g*TB + i, h] --------------
    eye = jnp.eye(TB, dtype=jnp.float32)
    hw_tiles = hw.reshape(num_b, TB, H)
    w2 = (eye[None, :, :, None] * hw_tiles[:, :, None, :]).reshape(num_b, TB, K)
    if M_pad != TB:
        w2 = jnp.pad(w2, ((0, 0), (0, M_pad - TB), (0, 0)))          # zero rows
    if enc_dtype == jnp.bfloat16:
        # hi/lo split keeps ~f32 accuracy while feeding the MXU pure bf16.
        hi = w2.astype(jnp.bfloat16)
        lo = (w2 - hi.astype(jnp.float32)).astype(jnp.bfloat16)
        w2 = jnp.stack([hi, lo], axis=1)                   # (num_b, 2, M_pad, K)
    else:
        w2 = w2.astype(enc_dtype)[:, None]                 # (num_b, 1, M_pad, K)
    n_passes = w2.shape[1]

    # Free reshape (metadata only): (L, B, H) -> (L, B*H).  No extra HBM pass.
    enc2 = encoder_outputs.reshape(L, B * H)

    out = pl.pallas_call(
        _attn_energies_kernel,
        out_shape=jax.ShapeDtypeStruct((num_b * M_pad, l_pad), jnp.float32),
        grid=(num_b, num_l),
        in_specs=[
            # tiny, resident across the inner L sweep (block index fixed in l)
            pl.BlockSpec((None, n_passes, M_pad, K), lambda g, l: (g, 0, 0, 0)),
            # dominant stream: auto double-buffered (tile_l, TB*H) blocks
            pl.BlockSpec((tile_l, K), lambda g, l: (l, g)),
        ],
        out_specs=pl.BlockSpec((M_pad, tile_l), lambda g, l: (g, l)),
        compiler_params=pltpu.CompilerParams(
            dimension_semantics=("parallel", "parallel"),   # v7x: 2 TCs share L
            vmem_limit_bytes=32 * 1024 * 1024,
        ),
    )(w2, enc2)

    # Drop batch-tile row padding and OOB L columns, then the (tiny) softmax
    # in XLA.  const is softmax-invariant but added for exact energy parity.
    energies = out.reshape(num_b, M_pad, l_pad)[:, :TB, :L].reshape(B, L)
    probs = jax.nn.softmax(energies + const[:, None], axis=1)
    return probs[:, None, :]                                 # (B, 1, L)


def attn_general_ref(hidden, encoder_outputs, w_attn, b_attn):
    """Pure-JAX reference mirroring the PyTorch double loop (vectorized)."""
    hp = jax.lax.Precision.HIGHEST
    proj = jnp.einsum("lbh,kh->lbk", encoder_outputs, w_attn,
                      precision=hp) + b_attn                 # nn.Linear
    energies = jnp.einsum("bh,lbh->bl", hidden[0], proj, precision=hp)
    return jax.nn.softmax(energies, axis=1)[:, None, :]      # (B, 1, L)


if __name__ == "__main__":
    def run_case(B, L, H, dtype, tile_l=None, tol=2e-3):
        key = jax.random.PRNGKey(0)
        k_hid, k_enc, k_w, k_b = jax.random.split(key, 4)
        hidden = jax.random.normal(k_hid, (1, B, H), jnp.float32).astype(dtype)
        enc = jax.random.normal(k_enc, (L, B, H), jnp.float32).astype(dtype)
        bound = 1.0 / np.sqrt(H)
        w_attn = jax.random.uniform(k_w, (H, H), jnp.float32, -bound, bound)
        b_attn = jax.random.uniform(k_b, (H,), jnp.float32, -bound, bound)

        out = jax.block_until_ready(
            attn_general(hidden, enc, w_attn, b_attn, tile_l=tile_l))
        ref = attn_general_ref(hidden.astype(jnp.float32),
                               enc.astype(jnp.float32), w_attn, b_attn)
        assert out.shape == (B, 1, L)
        np.testing.assert_allclose(np.asarray(out), np.asarray(ref),
                                   rtol=tol, atol=tol)

    # Shapes implied by the module: hidden (1,B,H), encoder_outputs (L,B,H).
    run_case(B=2, L=8, H=32, dtype=jnp.float32)                    # toy shape
    run_case(B=4, L=384, H=128, dtype=jnp.float32, tile_l=128)     # multi L tiles
    run_case(B=4, L=384, H=128, dtype=jnp.bfloat16, tile_l=128)    # bf16 stream
    run_case(B=16, L=384, H=128, dtype=jnp.float32, tile_l=128)    # 2 batch tiles
    run_case(B=16, L=256, H=128, dtype=jnp.bfloat16, tile_l=128)   # TB=16 bf16
    run_case(B=5, L=203, H=128, dtype=jnp.float32, tile_l=128)     # ragged L, no pad
    print("KERNEL_OK")
</pallas_src>

<mosaic_0001>
module attributes {stable_mosaic.version = 11 : i64} {
  func.func @_attn_energies_kernel(%arg0: i32, %arg1: i32, %arg2: memref<1x1x8x64xf32, #tpu.memory_space<vmem>>, %arg3: memref<8x64xf32, #tpu.memory_space<vmem>>, %arg4: memref<8x8xf32, #tpu.memory_space<vmem>>) attributes {dimension_semantics = [#tpu.dimension_semantics<parallel>, #tpu.dimension_semantics<parallel>], iteration_bounds = array<i64: 1, 1>, scalar_prefetch = 0 : i64, scratch_operands = 0 : i64, tpu.core_type = #tpu.core_type<tc>, window_params = [{transform_indices = @transform_0, window_bounds = array<i64: 1, 1, 8, 64>}, {transform_indices = @transform_1, window_bounds = array<i64: 8, 64>}, {transform_indices = @transform_2, window_bounds = array<i64: 8, 8>}]} {
    %c0 = arith.constant 0 : index
    %c0_0 = arith.constant 0 : index
    %0 = vector.load %arg3[%c0, %c0_0] : memref<8x64xf32, #tpu.memory_space<vmem>>, vector<8x64xf32>
    %c0_1 = arith.constant 0 : index
    %c0_2 = arith.constant 0 : index
    %c0_3 = arith.constant 0 : index
    %c0_4 = arith.constant 0 : index
    %1 = vector.load %arg2[%c0_1, %c0_2, %c0_3, %c0_4] : memref<1x1x8x64xf32, #tpu.memory_space<vmem>>, vector<1x1x8x64xf32>
    %2 = vector.shape_cast %1 : vector<1x1x8x64xf32> to vector<8x64xf32>
    %cst = arith.constant dense<0.000000e+00> : vector<8x8xf32>
    %3 = tpu.matmul %2, %0, %cst {dimension_numbers = #tpu.dot_dimension_numbers<[1], [1], [0], [0], [0, 0, 1, 0], [], []>} : vector<8x64xf32>, vector<8x64xf32>, vector<8x8xf32> -> vector<8x8xf32>
    %c0_5 = arith.constant 0 : index
    %c0_6 = arith.constant 0 : index
    %4 = vector.load %arg4[%c0_5, %c0_6] : memref<8x8xf32, #tpu.memory_space<vmem>>, vector<8x8xf32>
    tpu.vector_store %arg4[%c0_5, %c0_6], %3 {strides = array<i32>} : memref<8x8xf32, #tpu.memory_space<vmem>>, vector<8x8xf32>,
    return
  }
  func.func @transform_0(%arg0: i32, %arg1: i32) -> (i32, i32, i32, i32) {
    %c0_i32 = arith.constant 0 : i32
    %c0_i32_0 = arith.constant 0 : i32
    %c0_i32_1 = arith.constant 0 : i32
    %c0_i32_2 = arith.constant 0 : i32
    return %arg0, %c0_i32, %c0_i32_0, %c0_i32_1 : i32, i32, i32, i32
  }
  func.func @transform_1(%arg0: i32, %arg1: i32) -> (i32, i32) {
    %c0_i32 = arith.constant 0 : i32
    return %arg1, %arg0 : i32, i32
  }
  func.func @transform_2(%arg0: i32, %arg1: i32) -> (i32, i32) {
    %c0_i32 = arith.constant 0 : i32
    return %arg0, %arg1 : i32, i32
  }
}

</mosaic_0001>

<bundles_post_ra>
// kernel: tpu_custom_call.1
= control target key start
LH: loop header
LB: loop body
LE: loop exit
PB: predicated region body
PF: predicated region fallthrough
CT: control target
= control target key end

     0   :  { %7 = vsyncpa [#allocation3], 0  ;;  %s242_s0 = inlined_call_operand.hbm [shape: f32[1,1,8,64], index: 0, kind: input, shape index: {}]   ;;  %s243_s1 = inlined_call_operand.hbm [shape: f32[8,64], index: 1, kind: input, shape index: {}]   ;;  %s244_s2 = inlined_call_operand.hbm [shape: f32[8,8], index: 2, kind: output, shape index: {}]  }
   0x1   :  { %8 = vsyncpa [#allocation6], 0 }
   0x2   :  { %9 = vsyncpa [#allocation4], 0  ;;  %s213_s9 = smov [#allocation2]   ;;  %s214_s11 = smov [#allocation5]  }
   0x3   :  { %s16_s10 = sshll.u32 %s213_s9, 4  ;;  %s26_s12 = sshll.u32 %s214_s11, 4  ;;  %s17_s10 = int_to_ptr.vmem [resolvable:$true] %s16_s10  ;;  %s27_s12 = int_to_ptr.vmem [resolvable:$true] %s26_s12 }
   0x4   :  { %s155_s13 = scalar_lea.vmem %s17_s10, 128  ;;  %p160_p1 = scmp.lt.s32.totalorder %s17_s10, %s17_s10 }
   0x5   :  { %p156_p0 = scmp.ne.s32.totalorder %s17_s10, %s155_s13  ;;  %p161_p2 = scmp.lt.s32.totalorder %s155_s13, %s155_s13 }
   0x7   :  { %p162_p3 = por %p161_p2, %p160_p1 }
   0x9   :  { %p163_p4 = pnand %p162_p3, %p156_p0 }
   0xb   :  { %166 = shalt.err (!%p163_p4)
}
   0xc   :  { %19 = dma.hbm_to_vmem [thread:$0]  %s242_s0, 128, %s17_s10, [#allocation3]  }
   0xd   :  { %s175_s16 = scalar_lea.vmem %s27_s12, 128  ;;  %p180_p6 = scmp.lt.s32.totalorder %s27_s12, %s27_s12 }
   0xe   :  { %p176_p5 = scmp.ne.s32.totalorder %s27_s12, %s175_s16  ;;  %p181_p7 = scmp.lt.s32.totalorder %s175_s16, %s175_s16 }
  0x10   :  { %p182_p8 = por %p181_p7, %p180_p6 }
  0x12   :  { %p183_p9 = pnand %p182_p8, %p176_p5 }
  0x14   :  { %186 = shalt.err (!%p183_p9)
}
  0x15   :  { %29 = dma.hbm_to_vmem [thread:$0]  %s243_s1, 128, %s27_s12, [#allocation6]  }
  0x16   :  { %207 = dma.done.wait [#allocation3], 128  }
  0x17   :  { %208 = vsyncadd [#allocation3], 4294967168 }
  0x18   :  { %209 = dma.done.wait [#allocation6], 128  }
  0x19   :  { %210 = vsyncadd [#allocation6], 4294967168  ;;  %v215_v0 = vmov 0.0   ;;  %vm216_vm0 = vmmov 0   ;;  %vm38_vm1 = vcmask 523264   ;;  %v36_v1 = vld [vmem:[#allocation5] sm:$0xff] }
  0x1a   :  { %137 = vmatprep.subr.mxu0 %v215_v0  ;;  %139 = vmatprep.mubr.msk.f32.mxu0 %vm216_vm0, %v215_v0  ;;  %v37_v2 = vld [vmem:[#allocation2] sm:$0xff]  ;;  %s217_s0 = smov [#allocation7]   ;;  %vm115_vm2 = vcmask 64512  }
  0x1b   :  { %138 = vmatpush3.xpose.msk.msra.mxu0 %vm38_vm1, %v36_v1  ;;  %s123_s19 = sshll.u32 %s217_s0, 4  ;;  %s124_s19 = int_to_ptr.vmem [resolvable:$true] %s123_s19 }
  0x1c   :  { %s187_s1 = scalar_lea.vmem %s124_s19, 128  ;;  %p192_p11 = scmp.lt.s32.totalorder %s124_s19, %s124_s19 }
  0x1d   :  { %p188_p10 = scmp.ne.s32.totalorder %s124_s19, %s187_s1  ;;  %p193_p12 = scmp.lt.s32.totalorder %s187_s1, %s187_s1 }
  0x1e   :  { %140 = vmatmul.mubr.msk.f32.vlgmr.msra.gmra.mxu0 %vm38_vm1, %v37_v2 }
  0x1f   :  { %p194_p13 = por %p193_p12, %p192_p11 }
  0x21   :  { %p195_p0 = pnand %p194_p13, %p188_p10 }
  0xde   :  { %v111_v3 = vpop.f32.mrf.mxu0 }
  0xdf   :  { %116 = vst.msk [vmem:[#allocation7] sm:$0xff] %vm115_vm2, %v111_v3 }
  0xe0   :  { %v141_v4 = vpop.f32.mrf.mxu0 }
  0xe1   :  { %198 = shalt.err (!%p195_p0)
}
  0xe2   :  { %126 = dma.vmem_to_hbm [thread:$0]  %s124_s19, 128, %s244_s2, [#allocation4]  }
  0xe3   :  { %211 = dma.done.wait [#allocation4], 128  }
  0xe4   :  { %212 = vsyncadd [#allocation4], 4294967168 }
  0xe5   :  { %130 = vsyncpa [#allocation3], 1 }
  0xe6   :  { %131 = vsyncpa [#allocation6], 1 }
  0xe7   :  { %132 = vsyncpa [#allocation4], 1 }

</bundles_post_ra>
